<compile_context>
chip_gen: v7x
topology: tpu7x:2x2x1
jax: 0.10.0
libtpu: 0.0.40
codegen_flags: <defaults>
</compile_context>

<pallas_src>
import math

import jax
import jax.numpy as jnp
from jax.experimental import pallas as pl
from jax.experimental.pallas import tpu as pltpu

N = 3
INPUT_SIZE = N
OUTPUT_SIZE = N ** 2
HIDDEN = (512, 256, 128, 64)
BN_EPS = 1e-5
LEAKY_SLOPE = 0.01
OUT_PAD = 128          # lane-dense output width (real outputs live in [:, :9])
VEC_WIDTH = 512        # packed small-vector array lane width


def _bn_lrelu(h, gamma, beta):
    """Training-mode BatchNorm1d (biased variance, eps=1e-5) folded into a single
    scale/shift, followed by LeakyReLU(0.01). mean & mean-of-squares in one pass."""
    mu = jnp.mean(h, axis=0, keepdims=True)
    ms = jnp.mean(h * h, axis=0, keepdims=True)
    var = jnp.maximum(ms - mu * mu, 0.0)
    inv = jax.lax.rsqrt(var + BN_EPS)
    scale = gamma * inv
    shift = beta - mu * scale
    hn = h * scale + shift
    return jnp.where(hn >= 0, hn, LEAKY_SLOPE * hn)


def qnetwork_kernel(x_ref, vec_ref, w1_ref, w2_ref, w3_ref, w4_ref, o_ref):
    # x: (B, 3); vec: (12, 512) packed  [0:3]=w0 rows, [3:7]=gammas, [7:11]=betas, [11]=b4
    x = x_ref[...].astype(jnp.float32)
    vec = vec_ref[...]

    # fc0 as 3 VPU FMAs (K=3 would pad to the full MXU contraction width).
    # fc0-fc3 biases are dropped: cancelled exactly by the BN mean subtraction.
    h = (x[:, 0:1] * vec[0:1, :]
         + x[:, 1:2] * vec[1:2, :]
         + x[:, 2:3] * vec[2:3, :])                                  # (B, 512)
    h = _bn_lrelu(h, vec[3:4, :], vec[7:8, :])

    # fc1 + bn1 + leaky_relu
    h = jnp.dot(h, w1_ref[...], preferred_element_type=jnp.float32)  # (B, 256)
    h = _bn_lrelu(h, vec[4:5, :256], vec[8:9, :256])

    # fc2 + bn2 + leaky_relu
    h = jnp.dot(h, w2_ref[...], preferred_element_type=jnp.float32)  # (B, 128)
    h = _bn_lrelu(h, vec[5:6, :128], vec[9:10, :128])

    # fc3 + bn3 + leaky_relu
    h = jnp.dot(h, w3_ref[...], preferred_element_type=jnp.float32)  # (B, 64)
    h = _bn_lrelu(h, vec[6:7, :64], vec[10:11, :64])

    # fc4 (padded to 128 lanes) + bias + tanh; padded lanes are zeros -> tanh(0)=0.
    h = jnp.dot(h, w4_ref[...], preferred_element_type=jnp.float32) + vec[11:12, :OUT_PAD]
    o_ref[...] = jnp.tanh(h)                                          # (B, 128) lane-dense


def _pad_row(v, width=VEC_WIDTH):
    v = v.reshape(1, -1)
    return jnp.pad(v, ((0, 0), (0, width - v.shape[1])))


def qnetwork_forward(x, params):
    B = x.shape[0]
    (w0, _b0, g0, be0), (w1, _b1, g1, be1), (w2, _b2, g2, be2), (w3, _b3, g3, be3), (w4, b4) = params

    # Pack all tiny per-layer vectors (and the 3 rows of w0) into one (12, 512) array.
    vec = jnp.concatenate(
        [w0]                                               # rows 0..2 : fc0 weight (3, 512)
        + [_pad_row(g) for g in (g0, g1, g2, g3)]          # rows 3..6 : BN gammas
        + [_pad_row(b) for b in (be0, be1, be2, be3)]      # rows 7..10: BN betas
        + [_pad_row(b4)],                                  # row 11    : fc4 bias (padded)
        axis=0,
    )
    # fc4 weight padded to a lane-dense 128-wide output slab.
    w4p = jnp.pad(w4, ((0, 0), (0, OUT_PAD - OUTPUT_SIZE)))

    inputs = (x, vec, w1, w2, w3, w4p)
    in_specs = [pl.BlockSpec(memory_space=pltpu.MemorySpace.VMEM) for _ in inputs]

    flops = 2 * B * (3 * 512 + 512 * 256 + 256 * 128 + 128 * 64 + 64 * OUT_PAD) + 10 * B * 512
    bytes_accessed = 4 * (x.size + vec.size + w1.size + w2.size + w3.size + w4p.size + B * OUT_PAD)

    out_padded = pl.pallas_call(
        qnetwork_kernel,
        out_shape=jax.ShapeDtypeStruct((B, OUT_PAD), jnp.float32),
        in_specs=in_specs,
        out_specs=pl.BlockSpec(memory_space=pltpu.MemorySpace.VMEM),
        cost_estimate=pl.CostEstimate(
            flops=flops,
            transcendentals=B * OUT_PAD + 4 * 512,
            bytes_accessed=bytes_accessed,
        ),
    )(*inputs)

    return out_padded[:, :OUTPUT_SIZE]


def init_params(key):
    """Deterministic init matching QNetwork.init_weights:
    Linear: kaiming_normal_(fan_in, relu) -> std = sqrt(2 / fan_in); bias = 0
    BatchNorm1d: weight (gamma) = 1, bias (beta) = 0
    Weights stored as (in, out); biases / gamma / beta stored as (1, out)."""
    dims = (INPUT_SIZE,) + HIDDEN + (OUTPUT_SIZE,)
    params = []
    keys = jax.random.split(key, len(dims) - 1)
    for li in range(len(dims) - 1):
        fan_in, fan_out = dims[li], dims[li + 1]
        std = math.sqrt(2.0 / fan_in)
        w = std * jax.random.normal(keys[li], (fan_in, fan_out), dtype=jnp.float32)
        b = jnp.zeros((1, fan_out), dtype=jnp.float32)
        if li < len(dims) - 2:  # hidden layers have a BatchNorm1d
            gamma = jnp.ones((1, fan_out), dtype=jnp.float32)
            beta = jnp.zeros((1, fan_out), dtype=jnp.float32)
            params.append((w, b, gamma, beta))
        else:
            params.append((w, b))
    return params


def reference_forward(x, params):
    """Pure-JAX reference using the original (unoptimized) math:
    Linear with bias, two-pass biased variance BN, LeakyReLU, tanh head."""
    h = x
    for (w, b, g, be) in params[:-1]:
        h = h @ w + b
        mu = jnp.mean(h, axis=0, keepdims=True)
        var = jnp.mean((h - mu) ** 2, axis=0, keepdims=True)
        h = (h - mu) * jax.lax.rsqrt(var + BN_EPS) * g + be
        h = jnp.where(h >= 0, h, LEAKY_SLOPE * h)
    w, b = params[-1]
    return jnp.tanh(h @ w + b)


if __name__ == "__main__":
    key = jax.random.PRNGKey(0)
    k_params, k_x = jax.random.split(key)

    params = init_params(k_params)

    B = 8  # BatchNorm1d (training-mode stats) needs batch > 1
    x = jax.random.normal(k_x, (B, INPUT_SIZE), dtype=jnp.float32)

    out = jax.block_until_ready(qnetwork_forward(x, params))
    ref = jax.block_until_ready(reference_forward(x, params))

    assert out.shape == (B, OUTPUT_SIZE)
    assert jnp.allclose(out, ref, atol=1e-4, rtol=1e-4)

    print("KERNEL_OK")
</pallas_src>

<mosaic_0001>
module attributes {stable_mosaic.version = 11 : i64} {
  func.func @qnetwork_kernel(%arg0: memref<8x3xf32, #tpu.memory_space<vmem>>, %arg1: memref<12x512xf32, #tpu.memory_space<vmem>>, %arg2: memref<512x256xf32, #tpu.memory_space<vmem>>, %arg3: memref<256x128xf32, #tpu.memory_space<vmem>>, %arg4: memref<128x64xf32, #tpu.memory_space<vmem>>, %arg5: memref<64x128xf32, #tpu.memory_space<vmem>>, %arg6: memref<8x128xf32, #tpu.memory_space<vmem>>) attributes {dimension_semantics = [], scalar_prefetch = 0 : i64, scratch_operands = 0 : i64, tpu.core_type = #tpu.core_type<tc>} {
    %c0 = arith.constant 0 : index
    %c0_0 = arith.constant 0 : index
    %0 = vector.load %arg0[%c0, %c0_0] : memref<8x3xf32, #tpu.memory_space<vmem>>, vector<8x3xf32>
    %c0_1 = arith.constant 0 : index
    %c0_2 = arith.constant 0 : index
    %1 = vector.load %arg1[%c0_1, %c0_2] : memref<12x512xf32, #tpu.memory_space<vmem>>, vector<12x512xf32>
    %2 = vector.extract_strided_slice %0 {offsets = [0, 0], sizes = [8, 1], strides = [1, 1]} : vector<8x3xf32> to vector<8x1xf32>
    %3 = vector.extract_strided_slice %1 {offsets = [0, 0], sizes = [1, 512], strides = [1, 1]} : vector<12x512xf32> to vector<1x512xf32>
    %4 = vector.broadcast %2 : vector<8x1xf32> to vector<8x512xf32>
    %5 = vector.broadcast %3 : vector<1x512xf32> to vector<8x512xf32>
    %6 = arith.mulf %4, %5 : vector<8x512xf32>
    %7 = vector.extract_strided_slice %0 {offsets = [0, 1], sizes = [8, 1], strides = [1, 1]} : vector<8x3xf32> to vector<8x1xf32>
    %8 = vector.extract_strided_slice %1 {offsets = [1, 0], sizes = [1, 512], strides = [1, 1]} : vector<12x512xf32> to vector<1x512xf32>
    %9 = vector.broadcast %7 : vector<8x1xf32> to vector<8x512xf32>
    %10 = vector.broadcast %8 : vector<1x512xf32> to vector<8x512xf32>
    %11 = arith.mulf %9, %10 : vector<8x512xf32>
    %12 = arith.addf %6, %11 : vector<8x512xf32>
    %13 = vector.extract_strided_slice %0 {offsets = [0, 2], sizes = [8, 1], strides = [1, 1]} : vector<8x3xf32> to vector<8x1xf32>
    %14 = vector.extract_strided_slice %1 {offsets = [2, 0], sizes = [1, 512], strides = [1, 1]} : vector<12x512xf32> to vector<1x512xf32>
    %15 = vector.broadcast %13 : vector<8x1xf32> to vector<8x512xf32>
    %16 = vector.broadcast %14 : vector<1x512xf32> to vector<8x512xf32>
    %17 = arith.mulf %15, %16 : vector<8x512xf32>
    %18 = arith.addf %12, %17 : vector<8x512xf32>
    %19 = vector.extract_strided_slice %1 {offsets = [3, 0], sizes = [1, 512], strides = [1, 1]} : vector<12x512xf32> to vector<1x512xf32>
    %20 = vector.extract_strided_slice %1 {offsets = [7, 0], sizes = [1, 512], strides = [1, 1]} : vector<12x512xf32> to vector<1x512xf32>
    %cst = arith.constant dense<0.000000e+00> : vector<512xf32>
    %21 = vector.multi_reduction <add>, %18, %cst [0] : vector<8x512xf32> to vector<512xf32>
    %22 = vector.shape_cast %21 : vector<512xf32> to vector<1x512xf32>
    %cst_3 = arith.constant 8.000000e+00 : f32
    %23 = vector.broadcast %cst_3 : f32 to vector<1x512xf32>
    %24 = arith.divf %22, %23 : vector<1x512xf32>
    %25 = arith.mulf %18, %18 : vector<8x512xf32>
    %cst_4 = arith.constant dense<0.000000e+00> : vector<512xf32>
    %26 = vector.multi_reduction <add>, %25, %cst_4 [0] : vector<8x512xf32> to vector<512xf32>
    %27 = vector.shape_cast %26 : vector<512xf32> to vector<1x512xf32>
    %cst_5 = arith.constant 8.000000e+00 : f32
    %28 = vector.broadcast %cst_5 : f32 to vector<1x512xf32>
    %29 = arith.divf %27, %28 : vector<1x512xf32>
    %30 = arith.mulf %24, %24 : vector<1x512xf32>
    %31 = arith.subf %29, %30 : vector<1x512xf32>
    %cst_6 = arith.constant 0.000000e+00 : f32
    %32 = vector.broadcast %cst_6 : f32 to vector<1x512xf32>
    %33 = arith.maximumf %31, %32 : vector<1x512xf32>
    %cst_7 = arith.constant 9.99999974E-6 : f32
    %34 = vector.broadcast %cst_7 : f32 to vector<1x512xf32>
    %35 = arith.addf %33, %34 : vector<1x512xf32>
    %36 = math.rsqrt %35 : vector<1x512xf32>
    %37 = arith.mulf %19, %36 : vector<1x512xf32>
    %38 = arith.mulf %24, %37 : vector<1x512xf32>
    %39 = arith.subf %20, %38 : vector<1x512xf32>
    %40 = vector.broadcast %37 : vector<1x512xf32> to vector<8x512xf32>
    %41 = arith.mulf %18, %40 : vector<8x512xf32>
    %42 = vector.broadcast %39 : vector<1x512xf32> to vector<8x512xf32>
    %43 = arith.addf %41, %42 : vector<8x512xf32>
    %cst_8 = arith.constant 0.000000e+00 : f32
    %44 = vector.broadcast %cst_8 : f32 to vector<8x512xf32>
    %45 = arith.cmpf oge, %43, %44 : vector<8x512xf32>
    %cst_9 = arith.constant 0.00999999977 : f32
    %46 = vector.broadcast %cst_9 : f32 to vector<8x512xf32>
    %47 = arith.mulf %46, %43 : vector<8x512xf32>
    %48 = arith.select %45, %43, %47 : vector<8x512xi1>, vector<8x512xf32>
    %c0_10 = arith.constant 0 : index
    %c0_11 = arith.constant 0 : index
    %49 = vector.load %arg2[%c0_10, %c0_11] : memref<512x256xf32, #tpu.memory_space<vmem>>, vector<512x256xf32>
    %cst_12 = arith.constant dense<0.000000e+00> : vector<8x256xf32>
    %50 = tpu.matmul %48, %49, %cst_12 {dimension_numbers = #tpu.dot_dimension_numbers<[1], [0], [0], [1], [0, 0, 1, 1], [], []>} : vector<8x512xf32>, vector<512x256xf32>, vector<8x256xf32> -> vector<8x256xf32>
    %51 = vector.extract_strided_slice %1 {offsets = [4, 0], sizes = [1, 256], strides = [1, 1]} : vector<12x512xf32> to vector<1x256xf32>
    %52 = vector.extract_strided_slice %1 {offsets = [8, 0], sizes = [1, 256], strides = [1, 1]} : vector<12x512xf32> to vector<1x256xf32>
    %cst_13 = arith.constant dense<0.000000e+00> : vector<256xf32>
    %53 = vector.multi_reduction <add>, %50, %cst_13 [0] : vector<8x256xf32> to vector<256xf32>
    %54 = vector.shape_cast %53 : vector<256xf32> to vector<1x256xf32>
    %cst_14 = arith.constant 8.000000e+00 : f32
    %55 = vector.broadcast %cst_14 : f32 to vector<1x256xf32>
    %56 = arith.divf %54, %55 : vector<1x256xf32>
    %57 = arith.mulf %50, %50 : vector<8x256xf32>
    %cst_15 = arith.constant dense<0.000000e+00> : vector<256xf32>
    %58 = vector.multi_reduction <add>, %57, %cst_15 [0] : vector<8x256xf32> to vector<256xf32>
    %59 = vector.shape_cast %58 : vector<256xf32> to vector<1x256xf32>
    %cst_16 = arith.constant 8.000000e+00 : f32
    %60 = vector.broadcast %cst_16 : f32 to vector<1x256xf32>
    %61 = arith.divf %59, %60 : vector<1x256xf32>
    %62 = arith.mulf %56, %56 : vector<1x256xf32>
    %63 = arith.subf %61, %62 : vector<1x256xf32>
    %cst_17 = arith.constant 0.000000e+00 : f32
    %64 = vector.broadcast %cst_17 : f32 to vector<1x256xf32>
    %65 = arith.maximumf %63, %64 : vector<1x256xf32>
    %cst_18 = arith.constant 9.99999974E-6 : f32
    %66 = vector.broadcast %cst_18 : f32 to vector<1x256xf32>
    %67 = arith.addf %65, %66 : vector<1x256xf32>
    %68 = math.rsqrt %67 : vector<1x256xf32>
    %69 = arith.mulf %51, %68 : vector<1x256xf32>
    %70 = arith.mulf %56, %69 : vector<1x256xf32>
    %71 = arith.subf %52, %70 : vector<1x256xf32>
    %72 = vector.broadcast %69 : vector<1x256xf32> to vector<8x256xf32>
    %73 = arith.mulf %50, %72 : vector<8x256xf32>
    %74 = vector.broadcast %71 : vector<1x256xf32> to vector<8x256xf32>
    %75 = arith.addf %73, %74 : vector<8x256xf32>
    %cst_19 = arith.constant 0.000000e+00 : f32
    %76 = vector.broadcast %cst_19 : f32 to vector<8x256xf32>
    %77 = arith.cmpf oge, %75, %76 : vector<8x256xf32>
    %cst_20 = arith.constant 0.00999999977 : f32
    %78 = vector.broadcast %cst_20 : f32 to vector<8x256xf32>
    %79 = arith.mulf %78, %75 : vector<8x256xf32>
    %80 = arith.select %77, %75, %79 : vector<8x256xi1>, vector<8x256xf32>
    %c0_21 = arith.constant 0 : index
    %c0_22 = arith.constant 0 : index
    %81 = vector.load %arg3[%c0_21, %c0_22] : memref<256x128xf32, #tpu.memory_space<vmem>>, vector<256x128xf32>
    %cst_23 = arith.constant dense<0.000000e+00> : vector<8x128xf32>
    %82 = tpu.matmul %80, %81, %cst_23 {dimension_numbers = #tpu.dot_dimension_numbers<[1], [0], [0], [1], [0, 0, 1, 1], [], []>} : vector<8x256xf32>, vector<256x128xf32>, vector<8x128xf32> -> vector<8x128xf32>
    %83 = vector.extract_strided_slice %1 {offsets = [5, 0], sizes = [1, 128], strides = [1, 1]} : vector<12x512xf32> to vector<1x128xf32>
    %84 = vector.extract_strided_slice %1 {offsets = [9, 0], sizes = [1, 128], strides = [1, 1]} : vector<12x512xf32> to vector<1x128xf32>
    %cst_24 = arith.constant dense<0.000000e+00> : vector<128xf32>
    %85 = vector.multi_reduction <add>, %82, %cst_24 [0] : vector<8x128xf32> to vector<128xf32>
    %86 = vector.shape_cast %85 : vector<128xf32> to vector<1x128xf32>
    %cst_25 = arith.constant 8.000000e+00 : f32
    %87 = vector.broadcast %cst_25 : f32 to vector<1x128xf32>
    %88 = arith.divf %86, %87 : vector<1x128xf32>
    %89 = arith.mulf %82, %82 : vector<8x128xf32>
    %cst_26 = arith.constant dense<0.000000e+00> : vector<128xf32>
    %90 = vector.multi_reduction <add>, %89, %cst_26 [0] : vector<8x128xf32> to vector<128xf32>
    %91 = vector.shape_cast %90 : vector<128xf32> to vector<1x128xf32>
    %cst_27 = arith.constant 8.000000e+00 : f32
    %92 = vector.broadcast %cst_27 : f32 to vector<1x128xf32>
    %93 = arith.divf %91, %92 : vector<1x128xf32>
    %94 = arith.mulf %88, %88 : vector<1x128xf32>
    %95 = arith.subf %93, %94 : vector<1x128xf32>
    %cst_28 = arith.constant 0.000000e+00 : f32
    %96 = vector.broadcast %cst_28 : f32 to vector<1x128xf32>
    %97 = arith.maximumf %95, %96 : vector<1x128xf32>
    %cst_29 = arith.constant 9.99999974E-6 : f32
    %98 = vector.broadcast %cst_29 : f32 to vector<1x128xf32>
    %99 = arith.addf %97, %98 : vector<1x128xf32>
    %100 = math.rsqrt %99 : vector<1x128xf32>
    %101 = arith.mulf %83, %100 : vector<1x128xf32>
    %102 = arith.mulf %88, %101 : vector<1x128xf32>
    %103 = arith.subf %84, %102 : vector<1x128xf32>
    %104 = vector.broadcast %101 : vector<1x128xf32> to vector<8x128xf32>
    %105 = arith.mulf %82, %104 : vector<8x128xf32>
    %106 = vector.broadcast %103 : vector<1x128xf32> to vector<8x128xf32>
    %107 = arith.addf %105, %106 : vector<8x128xf32>
    %cst_30 = arith.constant 0.000000e+00 : f32
    %108 = vector.broadcast %cst_30 : f32 to vector<8x128xf32>
    %109 = arith.cmpf oge, %107, %108 : vector<8x128xf32>
    %cst_31 = arith.constant 0.00999999977 : f32
    %110 = vector.broadcast %cst_31 : f32 to vector<8x128xf32>
    %111 = arith.mulf %110, %107 : vector<8x128xf32>
    %112 = arith.select %109, %107, %111 : vector<8x128xi1>, vector<8x128xf32>
    %c0_32 = arith.constant 0 : index
    %c0_33 = arith.constant 0 : index
    %113 = vector.load %arg4[%c0_32, %c0_33] : memref<128x64xf32, #tpu.memory_space<vmem>>, vector<128x64xf32>
    %cst_34 = arith.constant dense<0.000000e+00> : vector<8x64xf32>
    %114 = tpu.matmul %112, %113, %cst_34 {dimension_numbers = #tpu.dot_dimension_numbers<[1], [0], [0], [1], [0, 0, 1, 1], [], []>} : vector<8x128xf32>, vector<128x64xf32>, vector<8x64xf32> -> vector<8x64xf32>
    %115 = vector.extract_strided_slice %1 {offsets = [6, 0], sizes = [1, 64], strides = [1, 1]} : vector<12x512xf32> to vector<1x64xf32>
    %116 = vector.extract_strided_slice %1 {offsets = [10, 0], sizes = [1, 64], strides = [1, 1]} : vector<12x512xf32> to vector<1x64xf32>
    %cst_35 = arith.constant dense<0.000000e+00> : vector<64xf32>
    %117 = vector.multi_reduction <add>, %114, %cst_35 [0] : vector<8x64xf32> to vector<64xf32>
    %118 = vector.shape_cast %117 : vector<64xf32> to vector<1x64xf32>
    %cst_36 = arith.constant 8.000000e+00 : f32
    %119 = vector.broadcast %cst_36 : f32 to vector<1x64xf32>
    %120 = arith.divf %118, %119 : vector<1x64xf32>
    %121 = arith.mulf %114, %114 : vector<8x64xf32>
    %cst_37 = arith.constant dense<0.000000e+00> : vector<64xf32>
    %122 = vector.multi_reduction <add>, %121, %cst_37 [0] : vector<8x64xf32> to vector<64xf32>
    %123 = vector.shape_cast %122 : vector<64xf32> to vector<1x64xf32>
    %cst_38 = arith.constant 8.000000e+00 : f32
    %124 = vector.broadcast %cst_38 : f32 to vector<1x64xf32>
    %125 = arith.divf %123, %124 : vector<1x64xf32>
    %126 = arith.mulf %120, %120 : vector<1x64xf32>
    %127 = arith.subf %125, %126 : vector<1x64xf32>
    %cst_39 = arith.constant 0.000000e+00 : f32
    %128 = vector.broadcast %cst_39 : f32 to vector<1x64xf32>
    %129 = arith.maximumf %127, %128 : vector<1x64xf32>
    %cst_40 = arith.constant 9.99999974E-6 : f32
    %130 = vector.broadcast %cst_40 : f32 to vector<1x64xf32>
    %131 = arith.addf %129, %130 : vector<1x64xf32>
    %132 = math.rsqrt %131 : vector<1x64xf32>
    %133 = arith.mulf %115, %132 : vector<1x64xf32>
    %134 = arith.mulf %120, %133 : vector<1x64xf32>
    %135 = arith.subf %116, %134 : vector<1x64xf32>
    %136 = vector.broadcast %133 : vector<1x64xf32> to vector<8x64xf32>
    %137 = arith.mulf %114, %136 : vector<8x64xf32>
    %138 = vector.broadcast %135 : vector<1x64xf32> to vector<8x64xf32>
    %139 = arith.addf %137, %138 : vector<8x64xf32>
    %cst_41 = arith.constant 0.000000e+00 : f32
    %140 = vector.broadcast %cst_41 : f32 to vector<8x64xf32>
    %141 = arith.cmpf oge, %139, %140 : vector<8x64xf32>
    %cst_42 = arith.constant 0.00999999977 : f32
    %142 = vector.broadcast %cst_42 : f32 to vector<8x64xf32>
    %143 = arith.mulf %142, %139 : vector<8x64xf32>
    %144 = arith.select %141, %139, %143 : vector<8x64xi1>, vector<8x64xf32>
    %c0_43 = arith.constant 0 : index
    %c0_44 = arith.constant 0 : index
    %145 = vector.load %arg5[%c0_43, %c0_44] : memref<64x128xf32, #tpu.memory_space<vmem>>, vector<64x128xf32>
    %cst_45 = arith.constant dense<0.000000e+00> : vector<8x128xf32>
    %146 = tpu.matmul %144, %145, %cst_45 {dimension_numbers = #tpu.dot_dimension_numbers<[1], [0], [0], [1], [0, 0, 1, 1], [], []>} : vector<8x64xf32>, vector<64x128xf32>, vector<8x128xf32> -> vector<8x128xf32>
    %147 = vector.extract_strided_slice %1 {offsets = [11, 0], sizes = [1, 128], strides = [1, 1]} : vector<12x512xf32> to vector<1x128xf32>
    %148 = vector.broadcast %147 : vector<1x128xf32> to vector<8x128xf32>
    %149 = arith.addf %146, %148 : vector<8x128xf32>
    %150 = math.tanh %149 : vector<8x128xf32>
    %c0_46 = arith.constant 0 : index
    %c0_47 = arith.constant 0 : index
    %151 = vector.load %arg6[%c0_46, %c0_47] : memref<8x128xf32, #tpu.memory_space<vmem>>, vector<8x128xf32>
    tpu.vector_store %arg6[%c0_46, %c0_47], %150 {strides = array<i32>} : memref<8x128xf32, #tpu.memory_space<vmem>>, vector<8x128xf32>,
    return
  }
}

</mosaic_0001>

<bundles_post_ra>
// kernel: tpu_custom_call.1
= control target key start
LH: loop header
LB: loop body
LE: loop exit
PB: predicated region body
PF: predicated region fallthrough
CT: control target
= control target key end

     0   :  { %11 = vsyncpa [#allocation3], 0  ;;  %s1745_s0 = inlined_call_operand.vmem [shape: f32[8,3], index: 0, kind: input, shape index: {}]   ;;  %s1746_s1 = inlined_call_operand.vmem [shape: f32[12,512], index: 1, kind: input, shape index: {}]   ;;  %s1747_s2 = inlined_call_operand.hbm [shape: f32[512,256], index: 2, kind: input, shape index: {}]   ;;  %s1748_s3 = inlined_call_operand.hbm [shape: f32[256,128], index: 3, kind: input, shape index: {}]   ;;  %s1749_s4 = inlined_call_operand.vmem [shape: f32[128,64], index: 4, kind: input, shape index: {}]   ;;  %s1750_s5 = inlined_call_operand.vmem [shape: f32[64,128], index: 5, kind: input, shape index: {}]   ;;  %s1751_s6 = inlined_call_operand.hbm [shape: f32[8,128], index: 6, kind: output, shape index: {}]  }
   0x1   :  { %12 = vsyncpa [#allocation6], 0 }
   0x2   :  { %13 = vsyncpa [#allocation4], 0  ;;  %s1439_s21 = smov [#allocation2]   ;;  %s1367_s25 = scalar_lea.hbm %s1747_s2, 16384 }
   0x3   :  { %s23_s22 = sshll.u32 %s1439_s21, 4  ;;  %p1368_p0 = scmp.ne.s32.totalorder %s1747_s2, %s1367_s25  ;;  %s24_s22 = int_to_ptr.vmem [resolvable:$true] %s23_s22 }
   0x4   :  { %p1371_p1 = scmp.lt.u32.totalorder %s1367_s25, %s1747_s2 }
   0x6   :  { %p1373_p2 = pnand %p1371_p1, %p1368_p0 }
   0x8   :  { %1376 = shalt.err (!%p1373_p2)
}
   0x9   :  { %s1377_s30 = scalar_lea.vmem %s24_s22, 16384  ;;  %p1382_p4 = scmp.lt.s32.totalorder %s24_s22, %s24_s22 }
   0xa   :  { %p1378_p3 = scmp.ne.s32.totalorder %s24_s22, %s1377_s30  ;;  %p1383_p5 = scmp.lt.s32.totalorder %s1377_s30, %s1377_s30 }
   0xc   :  { %p1384_p6 = por %p1383_p5, %p1382_p4 }
   0xe   :  { %p1385_p7 = pnand %p1384_p6, %p1378_p3 }
  0x10   :  { %1388 = shalt.err (!%p1385_p7)
}
  0x11   :  { %s1440_s7 = smov 256   ;;  %s1441_s8 = smov 16  }
  0x12   :  { %29 = dma.hbm_to_vmem [thread:$0]  %s1747_s2, 16384, %s24_s22, [#allocation3], %s1440_s7, %s1440_s7, %s1441_s8  }
  0x13   :  { %s1442_s11 = smov [#allocation5]   ;;  %s1389_s15 = scalar_lea.hbm %s1748_s3, 4096 }
  0x14   :  { %s35_s12 = sshll.u32 %s1442_s11, 4  ;;  %p1390_p8 = scmp.ne.s32.totalorder %s1748_s3, %s1389_s15  ;;  %s36_s12 = int_to_ptr.vmem [resolvable:$true] %s35_s12 }
  0x15   :  { %p1393_p9 = scmp.lt.u32.totalorder %s1389_s15, %s1748_s3 }
  0x17   :  { %p1395_p10 = pnand %p1393_p9, %p1390_p8 }
  0x19   :  { %1398 = shalt.err (!%p1395_p10)
}
  0x1a   :  { %s1399_s20 = scalar_lea.vmem %s36_s12, 4096  ;;  %p1404_p12 = scmp.lt.s32.totalorder %s36_s12, %s36_s12 }
  0x1b   :  { %p1400_p11 = scmp.ne.s32.totalorder %s36_s12, %s1399_s20  ;;  %p1405_p13 = scmp.lt.s32.totalorder %s1399_s20, %s1399_s20 }
  0x1d   :  { %p1406_p0 = por %p1405_p13, %p1404_p12 }
  0x1f   :  { %p1407_p1 = pnand %p1406_p0, %p1400_p11 }
  0x21   :  { %1410 = shalt.err (!%p1407_p1)
}
  0x22   :  { %s1443_s2 = smov 128   ;;  %s1444_s21 = smov 8  }
  0x23   :  { %41 = dma.hbm_to_vmem [thread:$0]  %s1748_s3, 4096, %s36_s12, [#allocation6], %s1443_s2, %s1443_s2, %s1444_s21  }
  0x24   :  { %1433 = dma.done.wait [#allocation3], 16384  }
  0x25   :  { %1434 = vsyncadd [#allocation3], 4294950912 }
  0x26   :  { %1435 = dma.done.wait [#allocation6], 4096  }
  0x27   :  { %1436 = vsyncadd [#allocation6], 4294963200  ;;  %v1445_v0 = vmov 0   ;;  %v1446_v1 = vmov 2   ;;  %v52_v2 = vld [vmem:[%s1745_s0] sm:$0xff]  ;;  %v298_v3 = vld [vmem:[#allocation2 + $0x8] sm:$0xff] }
  0x28   :  { %1344 = vset.pattern.permute.xlu0 %v1445_v0  ;;  %1346 = vset.pattern.permute.xlu1 %v1446_v1  ;;  %v300_v4 = vld [vmem:[#allocation2 + $0x18] sm:$0xff]  ;;  %v297_v6 = vld [vmem:[#allocation2] sm:$0xff]  ;;  %v299_v7 = vld [vmem:[#allocation2 + $0x10] sm:$0xff]  ;;  %v1447_v16 = vmov 1   ;;  %vm1449_vm6 = vmmov 0   ;;  %vm872_vm8 = vcmask 523264  }
  0x29   :  { %61 = vperm.xlu0 %1344, %v52_v2   ;;  %113 = vperm.xlu1 %1346, %v52_v2   ;;  %v1133_v5 = vpack.c.bf16 %v300_v4, %v298_v3  ;;  %v302_v8 = vld [vmem:[#allocation2 + $0x28] sm:$0xff]  ;;  %v1135_v9 = vpack.c.bf16 %v299_v7, %v297_v6  ;;  %v304_v10 = vld [vmem:[#allocation2 + $0x38] sm:$0xff]  ;;  %v301_v12 = vld [vmem:[#allocation2 + $0x20] sm:$0xff] }
  0x2a   :  { %v1137_v11 = vpack.c.bf16 %v304_v10, %v302_v8  ;;  %v303_v13 = vld [vmem:[#allocation2 + $0x30] sm:$0xff]  ;;  %v306_v14 = vld [vmem:[#allocation2 + $0x48] sm:$0xff]  ;;  %v308_v15 = vld [vmem:[#allocation2 + $0x58] sm:$0xff] }
  0x2b   :  { %1134 = vmatprep.subr.bf16.mxu0 %v1133_v5  ;;  %v1139_v17 = vpack.c.bf16 %v303_v13, %v301_v12  ;;  %v1141_v18 = vpack.c.bf16 %v308_v15, %v306_v14  ;;  %v305_v19 = vld [vmem:[#allocation2 + $0x40] sm:$0xff]  ;;  %v307_v20 = vld [vmem:[#allocation2 + $0x50] sm:$0xff]  ;;  %v310_v21 = vld [vmem:[#allocation2 + $0x68] sm:$0xff] }
  0x2c   :  { %1136 = vmatpush1.bf16.msra.mxu0 %v1135_v9  ;;  %v312_v22 = vld [vmem:[#allocation2 + $0x78] sm:$0xff]  ;;  %v1143_v23 = vpack.c.bf16 %v307_v20, %v305_v19  ;;  %v309_v25 = vld [vmem:[#allocation2 + $0x60] sm:$0xff]  ;;  %v311_v26 = vld [vmem:[#allocation2 + $0x70] sm:$0xff] }
  0x2d   :  { %1345 = vset.pattern.permute.xlu0 %v1447_v16  ;;  %1138 = vmatprep.subr.bf16.mxu0 %v1137_v11  ;;  %v1145_v24 = vpack.c.bf16 %v312_v22, %v310_v21  ;;  %v314_v27 = vld [vmem:[#allocation2 + $0x88] sm:$0xff]  ;;  %v316_v28 = vld [vmem:[#allocation2 + $0x98] sm:$0xff]  ;;  %v1147_v29 = vpack.c.bf16 %v311_v26, %v309_v25  ;;  %v313_v31 = vld [vmem:[#allocation2 + $0x80] sm:$0xff] }
  0x2e   :  { %85 = vperm.xlu0 %1345, %v52_v2   ;;  %v1149_v30 = vpack.c.bf16 %v316_v28, %v314_v27  ;;  %v315_v32 = vld [vmem:[#allocation2 + $0x90] sm:$0xff]  ;;  %v318_v33 = vld [vmem:[#allocation2 + $0xa8] sm:$0xff]  ;;  %v320_v34 = vld [vmem:[#allocation2 + $0xb8] sm:$0xff] }
  0x2f   :  { %v1151_v35 = vpack.c.bf16 %v315_v32, %v313_v31  ;;  %v1153_v36 = vpack.c.bf16 %v320_v34, %v318_v33  ;;  %v317_v37 = vld [vmem:[#allocation2 + $0xa0] sm:$0xff]  ;;  %v319_v38 = vld [vmem:[#allocation2 + $0xb0] sm:$0xff]  ;;  %v322_v39 = vld [vmem:[#allocation2 + $0xc8] sm:$0xff] }
  0x30   :  { %1140 = vmatpush1.bf16.msra.mxu0 %v1139_v17  ;;  %v324_v40 = vld [vmem:[#allocation2 + $0xd8] sm:$0xff]  ;;  %v1155_v41 = vpack.c.bf16 %v319_v38, %v317_v37  ;;  %v321_v43 = vld [vmem:[#allocation2 + $0xc0] sm:$0xff]  ;;  %v323_v44 = vld [vmem:[#allocation2 + $0xd0] sm:$0xff] }
  0x31   :  { %1142 = vmatprep.subr.bf16.mxu0 %v1141_v18  ;;  %v1157_v42 = vpack.c.bf16 %v324_v40, %v322_v39  ;;  %v326_v45 = vld [vmem:[#allocation2 + $0xe8] sm:$0xff]  ;;  %v328_v46 = vld [vmem:[#allocation2 + $0xf8] sm:$0xff]  ;;  %v1159_v47 = vpack.c.bf16 %v323_v44, %v321_v43  ;;  %v325_v49 = vld [vmem:[#allocation2 + $0xe0] sm:$0xff]  ;;  %v64_v39 = vlaneseq }
  0x32   :  { %1347 = vset.pattern.permute.xlu0 %v1446_v1  ;;  %v1161_v48 = vpack.c.bf16 %v328_v46, %v326_v45  ;;  %v327_v50 = vld [vmem:[#allocation2 + $0xf0] sm:$0xff]  ;;  %v330_v51 = vld [vmem:[#allocation2 + $0x108] sm:$0xff]  ;;  %v332_v52 = vld [vmem:[#allocation2 + $0x118] sm:$0xff] }
  0x33   :  { %v1163_v53 = vpack.c.bf16 %v327_v50, %v325_v49  ;;  %v1165_v54 = vpack.c.bf16 %v332_v52, %v330_v51  ;;  %v329_v55 = vld [vmem:[#allocation2 + $0x100] sm:$0xff]  ;;  %v331_v56 = vld [vmem:[#allocation2 + $0x110] sm:$0xff]  ;;  %v334_v57 = vld [vmem:[#allocation2 + $0x128] sm:$0xff]  ;;  %v1514_v40 = vshrl.u32 %v64_v39, 7 }
  0x34   :  { %1144 = vmatpush1.bf16.msra.mxu0 %v1143_v23  ;;  %v336_v58 = vld [vmem:[#allocation2 + $0x138] sm:$0xff]  ;;  %v1167_v59 = vpack.c.bf16 %v331_v56, %v329_v55  ;;  %v333_v61 = vld [vmem:[#allocation2 + $0x120] sm:$0xff]  ;;  %v335_v62 = vld [vmem:[#allocation2 + $0x130] sm:$0xff] }
  0x35   :  { %1146 = vmatprep.subr.bf16.mxu0 %v1145_v24  ;;  %v1169_v60 = vpack.c.bf16 %v336_v58, %v334_v57  ;;  %v338_v63 = vld [vmem:[#allocation2 + $0x148] sm:$0xff]  ;;  %v340_v0 = vld [vmem:[#allocation2 + $0x158] sm:$0xff]  ;;  %v1171_v1 = vpack.c.bf16 %v335_v62, %v333_v61  ;;  %v337_v3 = vld [vmem:[#allocation2 + $0x140] sm:$0xff]  ;;  %v1540_v46 = vsub.s32 2, %v1514_v40 }
  0x36   :  { %v1173_v2 = vpack.c.bf16 %v340_v0, %v338_v63  ;;  %v339_v4 = vld [vmem:[#allocation2 + $0x150] sm:$0xff]  ;;  %v342_v5 = vld [vmem:[#allocation2 + $0x168] sm:$0xff]  ;;  %v344_v6 = vld [vmem:[#allocation2 + $0x178] sm:$0xff] }
  0x37   :  { %v1175_v7 = vpack.c.bf16 %v339_v4, %v337_v3  ;;  %v1177_v8 = vpack.c.bf16 %v344_v6, %v342_v5  ;;  %v341_v9 = vld [vmem:[#allocation2 + $0x160] sm:$0xff]  ;;  %v343_v10 = vld [vmem:[#allocation2 + $0x170] sm:$0xff]  ;;  %v346_v11 = vld [vmem:[#allocation2 + $0x188] sm:$0xff] }
  0x38   :  { %1148 = vmatpush1.bf16.msra.mxu0 %v1147_v29  ;;  %v348_v12 = vld [vmem:[#allocation2 + $0x198] sm:$0xff]  ;;  %v1179_v13 = vpack.c.bf16 %v343_v10, %v341_v9  ;;  %v345_v15 = vld [vmem:[#allocation2 + $0x180] sm:$0xff]  ;;  %v347_v16 = vld [vmem:[#allocation2 + $0x190] sm:$0xff] }
  0x39   :  { %1150 = vmatprep.subr.bf16.mxu0 %v1149_v30  ;;  %v1181_v14 = vpack.c.bf16 %v348_v12, %v346_v11  ;;  %v350_v17 = vld [vmem:[#allocation2 + $0x1a8] sm:$0xff]  ;;  %v352_v18 = vld [vmem:[#allocation2 + $0x1b8] sm:$0xff]  ;;  %v1183_v19 = vpack.c.bf16 %v347_v16, %v345_v15  ;;  %v349_v21 = vld [vmem:[#allocation2 + $0x1a0] sm:$0xff] }
  0x3a   :  { %v1185_v20 = vpack.c.bf16 %v352_v18, %v350_v17  ;;  %v351_v22 = vld [vmem:[#allocation2 + $0x1b0] sm:$0xff]  ;;  %v354_v23 = vld [vmem:[#allocation2 + $0x1c8] sm:$0xff]  ;;  %v356_v24 = vld [vmem:[#allocation2 + $0x1d8] sm:$0xff] }
  0x3b   :  { %v1187_v25 = vpack.c.bf16 %v351_v22, %v349_v21  ;;  %v1189_v26 = vpack.c.bf16 %v356_v24, %v354_v23  ;;  %v353_v27 = vld [vmem:[#allocation2 + $0x1c0] sm:$0xff]  ;;  %v355_v28 = vld [vmem:[#allocation2 + $0x1d0] sm:$0xff]  ;;  %v358_v29 = vld [vmem:[#allocation2 + $0x1e8] sm:$0xff] }
  0x3c   :  { %1152 = vmatpush1.bf16.msra.mxu0 %v1151_v35  ;;  %v360_v30 = vld [vmem:[#allocation2 + $0x1f8] sm:$0xff]  ;;  %v1191_v31 = vpack.c.bf16 %v355_v28, %v353_v27  ;;  %v357_v33 = vld [vmem:[#allocation2 + $0x1e0] sm:$0xff]  ;;  %v359_v34 = vld [vmem:[#allocation2 + $0x1f0] sm:$0xff] }
  0x3d   :  { %1154 = vmatprep.subr.bf16.mxu0 %v1153_v36  ;;  %v1193_v32 = vpack.c.bf16 %v360_v30, %v358_v29  ;;  %v362_v35 = vld [vmem:[#allocation2 + $0x208] sm:$0xff]  ;;  %v364_v36 = vld [vmem:[#allocation2 + $0x218] sm:$0xff]  ;;  %v1195_v37 = vpack.c.bf16 %v359_v34, %v357_v33  ;;  %v1527_v43 = vld [vmem:[%s1746_s1 + $0x8] sm:$0xff] }
  0x3e   :  { %v1197_v38 = vpack.c.bf16 %v364_v36, %v362_v35  ;;  %v1532_v44 = vld [vmem:[%s1746_s1 + $0x10] sm:$0xff]  ;;  %v1537_v45 = vld [vmem:[%s1746_s1 + $0x18] sm:$0xff] }
  0x3f   :  { %v127_v55 = vrot.slane %v1532_v44, %v1540_v46  ;;  %v131_v56 = vrot.slane %v1537_v45, %v1540_v46 }
  0x40   :  { %1156 = vmatpush1.bf16.msra.mxu0 %v1155_v41  ;;  %v1519_v41 = vld [vmem:[%s1746_s1] sm:$0xff] }
  0x41   :  { %1158 = vmatprep.subr.bf16.mxu0 %v1157_v42  ;;  %v1522_v42 = vsub.s32 0, %v1514_v40 }
  0x43   :  { %v71_v49 = vrot.slane %v1527_v43, %v1522_v42  ;;  %v75_v50 = vrot.slane %v1532_v44, %v1522_v42  ;;  %v79_v51 = vrot.slane %v1537_v45, %v1522_v42 }
  0x44   :  { %1160 = vmatpush1.bf16.msra.mxu0 %v1159_v47  ;;  %v1543_v47 = vsub.s32 1, %v1514_v40 }
  0x45   :  { %1162 = vmatprep.subr.bf16.mxu0 %v1161_v48  ;;  %v67_v48 = vrot.slane %v1519_v41, %v1522_v42 }
  0x46   :  { %v91_v57 = vrot.slane %v1519_v41, %v1543_v47  ;;  %v95_v58 = vrot.slane %v1527_v43, %v1543_v47 }
  0x48   :  { %1164 = vmatpush1.bf16.msra.mxu0 %v1163_v53  ;;  %v119_v53 = vrot.slane %v1519_v41, %v1540_v46 }
  0x49   :  { %1166 = vmatprep.subr.bf16.mxu0 %v1165_v54  ;;  %v123_v54 = vrot.slane %v1527_v43, %v1540_v46 }
  0x4c   :  { %1168 = vmatpush1.bf16.msra.mxu0 %v1167_v59  ;;  %v99_v59 = vrot.slane %v1532_v44, %v1543_v47 }
  0x4d   :  { %1170 = vmatprep.subr.bf16.mxu0 %v1169_v60  ;;  %v103_v60 = vrot.slane %v1537_v45, %v1543_v47 }
  0x50   :  { %1172 = vmatpush1.bf16.msra.mxu0 %v1171_v1 }
  0x51   :  { %1174 = vmatprep.subr.bf16.mxu0 %v1173_v2 }
  0x54   :  { %1176 = vmatpush1.bf16.msra.mxu0 %v1175_v7 }
  0x55   :  { %1178 = vmatprep.subr.bf16.mxu0 %v1177_v8 }
  0x58   :  { %1180 = vmatpush1.bf16.msra.mxu0 %v1179_v13 }
  0x59   :  { %1182 = vmatprep.subr.bf16.mxu0 %v1181_v14 }
  0x5c   :  { %1184 = vmatpush1.bf16.msra.mxu0 %v1183_v19 }
  0x5d   :  { %1186 = vmatprep.subr.bf16.mxu0 %v1185_v20 }
  0x60   :  { %1188 = vmatpush1.bf16.msra.mxu0 %v1187_v25 }
  0x61   :  { %1190 = vmatprep.subr.bf16.mxu0 %v1189_v26 }
  0x64   :  { %1192 = vmatpush1.bf16.msra.mxu0 %v1191_v31 }
  0x65   :  { %1194 = vmatprep.subr.bf16.mxu0 %v1193_v32 }
  0x68   :  { %1196 = vmatpush1.bf16.msra.mxu0 %v1195_v37 }
  0x69   :  { %1198 = vmatprep.subr.bf16.mxu0 %v1197_v38 }
  0xa8   :  { %v62_v52 = vpop.permute.xlu0 %61  ;;  %v114_v61 = vpop.permute.xlu1 %113 }
  0xa9   :  { %v80_v62 = vmul.f32 %v67_v48, %v62_v52  ;;  %v81_v63 = vmul.f32 %v71_v49, %v62_v52  ;;  %v82_v0 = vmul.f32 %v75_v50, %v62_v52  ;;  %v83_v1 = vmul.f32 %v79_v51, %v62_v52 }
  0xaa   :  { %v132_v3 = vmul.f32 %v119_v53, %v114_v61  ;;  %v133_v4 = vmul.f32 %v123_v54, %v114_v61  ;;  %v134_v5 = vmul.f32 %v127_v55, %v114_v61  ;;  %v135_v6 = vmul.f32 %v131_v56, %v114_v61 }
  0xad   :  { %v86_v2 = vpop.permute.xlu0 %85 }
  0xae   :  { %v104_v7 = vmul.f32 %v91_v57, %v86_v2  ;;  %v105_v8 = vmul.f32 %v95_v58, %v86_v2  ;;  %v106_v9 = vmul.f32 %v99_v59, %v86_v2  ;;  %v107_v10 = vmul.f32 %v103_v60, %v86_v2 }
  0xb0   :  { %v108_v11 = vadd.f32 %v104_v7, %v80_v62  ;;  %v109_v12 = vadd.f32 %v105_v8, %v81_v63  ;;  %v110_v13 = vadd.f32 %v106_v9, %v82_v0  ;;  %v111_v14 = vadd.f32 %v107_v10, %v83_v1 }
  0xb2   :  { %v1569_v15 = vadd.f32 %v132_v3, %v108_v11  ;;  %v1571_v16 = vadd.f32 %v133_v4, %v109_v12  ;;  %v1573_v17 = vadd.f32 %v134_v5, %v110_v13  ;;  %v1575_v18 = vadd.f32 %v135_v6, %v111_v14 }
  0xb4   :  { %v140_v19 = vrot.slane %v1569_v15, 4  ;;  %v146_v20 = vrot.slane %v1571_v16, 4  ;;  %v152_v21 = vrot.slane %v1573_v17, 4  ;;  %v158_v22 = vrot.slane %v1575_v18, 4 }
  0xb5   :  { %v169_v23 = vmul.f32 %v1569_v15, %v1569_v15  ;;  %v170_v24 = vmul.f32 %v1571_v16, %v1571_v16  ;;  %v171_v25 = vmul.f32 %v1573_v17, %v1573_v17  ;;  %v172_v26 = vmul.f32 %v1575_v18, %v1575_v18 }
  0xb6   :  { %v141_v27 = vadd.f32 %v140_v19, %v1569_v15  ;;  %v147_v28 = vadd.f32 %v146_v20, %v1571_v16  ;;  %v153_v29 = vadd.f32 %v152_v21, %v1573_v17  ;;  %v159_v30 = vadd.f32 %v158_v22, %v1575_v18 }
  0xb7   :  { %v173_v31 = vrot.slane %v169_v23, 4  ;;  %v179_v32 = vrot.slane %v170_v24, 4  ;;  %v185_v33 = vrot.slane %v171_v25, 4  ;;  %v191_v34 = vrot.slane %v172_v26, 4 }
  0xb8   :  { %v142_v35 = vrot.slane %v141_v27, 2  ;;  %v148_v36 = vrot.slane %v147_v28, 2  ;;  %v154_v37 = vrot.slane %v153_v29, 2  ;;  %v160_v38 = vrot.slane %v159_v30, 2 }
  0xb9   :  { %v174_v39 = vadd.f32 %v173_v31, %v169_v23  ;;  %v180_v48 = vadd.f32 %v179_v32, %v170_v24  ;;  %v186_v49 = vadd.f32 %v185_v33, %v171_v25  ;;  %v192_v50 = vadd.f32 %v191_v34, %v172_v26 }
  0xba   :  { %v143_v51 = vadd.f32 %v142_v35, %v141_v27  ;;  %v155_v52 = vadd.f32 %v154_v37, %v153_v29  ;;  %v161_v53 = vadd.f32 %v160_v38, %v159_v30  ;;  %v149_v54 = vadd.f32 %v148_v36, %v147_v28 }
  0xbb   :  { %v175_v55 = vrot.slane %v174_v39, 2  ;;  %v181_v56 = vrot.slane %v180_v48, 2  ;;  %v187_v57 = vrot.slane %v186_v49, 2  ;;  %v193_v58 = vrot.slane %v192_v50, 2 }
  0xbc   :  { %v156_v59 = vrot.slane %v155_v52, 1  ;;  %v150_v60 = vrot.slane %v149_v54, 1  ;;  %v144_v61 = vrot.slane %v143_v51, 1  ;;  %v162_v62 = vrot.slane %v161_v53, 1 }
  0xbd   :  { %v176_v63 = vadd.f32 %v175_v55, %v174_v39  ;;  %v182_v0 = vadd.f32 %v181_v56, %v180_v48  ;;  %v188_v1 = vadd.f32 %v187_v57, %v186_v49  ;;  %v194_v2 = vadd.f32 %v193_v58, %v192_v50 }
  0xbe   :  { %v151_v3 = vadd.f32 %v150_v60, %v149_v54  ;;  %v145_v4 = vadd.f32 %v144_v61, %v143_v51  ;;  %v163_v5 = vadd.f32 %v162_v62, %v161_v53  ;;  %v157_v6 = vadd.f32 %v156_v59, %v155_v52 }
  0xbf   :  { %v177_v7 = vrot.slane %v176_v63, 1  ;;  %v183_v8 = vrot.slane %v182_v0, 1  ;;  %v189_v9 = vrot.slane %v188_v1, 1  ;;  %v195_v10 = vrot.slane %v194_v2, 1 }
  0xc0   :  { %v166_v11 = vmul.f32 0.125, %v151_v3  ;;  %v165_v12 = vmul.f32 0.125, %v145_v4  ;;  %v168_v13 = vmul.f32 0.125, %v163_v5  ;;  %v167_v14 = vmul.f32 0.125, %v157_v6 }
  0xc1   :  { %v178_v19 = vadd.f32 %v177_v7, %v176_v63  ;;  %v190_v20 = vadd.f32 %v189_v9, %v188_v1  ;;  %v196_v21 = vadd.f32 %v195_v10, %v194_v2  ;;  %v184_v22 = vadd.f32 %v183_v8, %v182_v0 }
  0xc2   :  { %v202_v23 = vmul.f32 %v166_v11, %v166_v11  ;;  %v201_v24 = vmul.f32 %v165_v12, %v165_v12  ;;  %v204_v25 = vmul.f32 %v168_v13, %v168_v13  ;;  %v203_v26 = vmul.f32 %v167_v14, %v167_v14 }
  0xc3   :  { %v197_v27 = vmul.f32 0.125, %v178_v19  ;;  %v199_v28 = vmul.f32 0.125, %v190_v20  ;;  %v200_v29 = vmul.f32 0.125, %v196_v21  ;;  %v198_v30 = vmul.f32 0.125, %v184_v22  ;;  %v361_v22 = vld [vmem:[#allocation2 + $0x200] sm:$0xff] }
  0xc4   :  { %v1595_v54 = vsub.s32 3, %v1514_v40  ;;  %v267_v0 = vsub.s32 7, %v1514_v40 }
  0xc5   :  { %v206_v31 = vsub.f32 %v198_v30, %v202_v23  ;;  %v205_v32 = vsub.f32 %v197_v27, %v201_v24  ;;  %v208_v33 = vsub.f32 %v200_v29, %v204_v25  ;;  %v207_v34 = vsub.f32 %v199_v28, %v203_v26  ;;  %v363_v23 = vld [vmem:[#allocation2 + $0x210] sm:$0xff]  ;;  %v366_v27 = vld [vmem:[#allocation2 + $0x228] sm:$0xff]  ;;  %v368_v28 = vld [vmem:[#allocation2 + $0x238] sm:$0xff] }
  0xc7   :  { %v210_v35 = vmax.f32 %v206_v31, 0.0  ;;  %v209_v36 = vmax.f32 %v205_v32, 0.0  ;;  %v212_v37 = vmax.f32 %v208_v33, 0.0  ;;  %v211_v38 = vmax.f32 %v207_v34, 0.0 }
  0xc8   :  { %v1199_v31 = vpack.c.bf16 %v363_v23, %v361_v22  ;;  %v1201_v34 = vpack.c.bf16 %v368_v28, %v366_v27  ;;  %v394_v22 = vld [vmem:[#allocation2 + $0x308] sm:$0xff]  ;;  %v396_v23 = vld [vmem:[#allocation2 + $0x318] sm:$0xff]  ;;  %v395_v27 = vld [vmem:[#allocation2 + $0x310] sm:$0xff] }
  0xc9   :  { %v214_v39 = vadd.f32 1e-05, %v210_v35  ;;  %v213_v48 = vadd.f32 1e-05, %v209_v36  ;;  %v216_v49 = vadd.f32 1e-05, %v212_v37 }
  0xca   :  { %v215_v50 = vadd.f32 1e-05, %v211_v38  ;;  %v367_v35 = vld [vmem:[#allocation2 + $0x230] sm:$0xff]  ;;  %v370_v37 = vld [vmem:[#allocation2 + $0x248] sm:$0xff]  ;;  %v372_v38 = vld [vmem:[#allocation2 + $0x258] sm:$0xff] }
  0xcb   :  { %1348 = vrsqrt.f32 %v214_v39  ;;  %v398_v28 = vld [vmem:[#allocation2 + $0x328] sm:$0xff] }
  0xcc   :  { %1350 = vrsqrt.f32 %v213_v48  ;;  %v1205_v48 = vpack.c.bf16 %v372_v38, %v370_v37  ;;  %v408_v37 = vld [vmem:[#allocation2 + $0x378] sm:$0xff] }
  0xcd   :  { %1352 = vrsqrt.f32 %v216_v49  ;;  %v369_v49 = vld [vmem:[#allocation2 + $0x240] sm:$0xff] }
  0xce   :  { %1354 = vrsqrt.f32 %v215_v50  ;;  %v371_v50 = vld [vmem:[#allocation2 + $0x250] sm:$0xff] }
  0xd5   :  { %v1349_v51 = vpop.eup %1348 }
  0xd6   :  { %v1351_v52 = vpop.eup %1350  ;;  %v222_v53 = vmul.f32 %v1349_v51, %v1527_v43  ;;  %v374_v51 = vld [vmem:[#allocation2 + $0x268] sm:$0xff] }
  0xd7   :  { %v1353_v55 = vpop.eup %1352  ;;  %v221_v56 = vmul.f32 %v1351_v52, %v1519_v41  ;;  %v376_v52 = vld [vmem:[#allocation2 + $0x278] sm:$0xff] }
  0xd8   :  { %v1355_v57 = vpop.eup %1354  ;;  %v226_v58 = vmul.f32 %v222_v53, %v166_v11  ;;  %v224_v59 = vmul.f32 %v1353_v55, %v1537_v45  ;;  %v252_v63 = vrot.slane %v222_v53, %v1595_v54  ;;  %v1207_v53 = vpack.c.bf16 %v371_v50, %v369_v49  ;;  %v410_v49 = vld [vmem:[#allocation2 + $0x388] sm:$0xff]  ;;  %v412_v50 = vld [vmem:[#allocation2 + $0x398] sm:$0xff] }
  0xd9   :  { %v225_v60 = vmul.f32 %v221_v56, %v165_v12  ;;  %v223_v61 = vmul.f32 %v1355_v57, %v1532_v44  ;;  %v248_v3 = vrot.slane %v221_v56, %v1595_v54  ;;  %v1209_v55 = vpack.c.bf16 %v376_v52, %v374_v51  ;;  %v373_v56 = vld [vmem:[#allocation2 + $0x260] sm:$0xff]  ;;  %v375_v57 = vld [vmem:[#allocation2 + $0x270] sm:$0xff] }
  0xda   :  { %v234_v62 = vrot.slane %v226_v58, 4  ;;  %v228_v1 = vmul.f32 %v224_v59, %v168_v13  ;;  %v260_v7 = vrot.slane %v224_v59, %v1595_v54  ;;  %v262_v11 = vmul.f32 %v252_v63, %v1571_v16  ;;  %v378_v58 = vld [vmem:[#allocation2 + $0x288] sm:$0xff]  ;;  %v380_v59 = vld [vmem:[#allocation2 + $0x298] sm:$0xff]  ;;  %v379_v63 = vld [vmem:[#allocation2 + $0x290] sm:$0xff] }
  0xdb   :  { %v233_v2 = vrot.slane %v225_v60, 4  ;;  %v227_v4 = vmul.f32 %v223_v61, %v167_v14  ;;  %v256_v10 = vrot.slane %v223_v61, %v1595_v54  ;;  %v261_v13 = vmul.f32 %v248_v3, %v1569_v15 }
  0xdc   :  { %v242_v5 = vsub.f32 %v1527_v43, %v234_v62  ;;  %v236_v6 = vrot.slane %v228_v1, 4  ;;  %v264_v24 = vmul.f32 %v260_v7, %v1575_v18  ;;  %v365_v18 = vld [vmem:[#allocation2 + $0x220] sm:$0xff]  ;;  %v1211_v60 = vpack.c.bf16 %v375_v57, %v373_v56  ;;  %v384_v1 = vld [vmem:[#allocation2 + $0x2b8] sm:$0xff]  ;;  %v414_v56 = vld [vmem:[#allocation2 + $0x3a8] sm:$0xff] }
  0xdd   :  { %v241_v8 = vsub.f32 %v1519_v41, %v233_v2  ;;  %v235_v9 = vrot.slane %v227_v4, 4  ;;  %v263_v29 = vmul.f32 %v256_v10, %v1573_v17  ;;  %v1203_v39 = vpack.c.bf16 %v367_v35, %v365_v18  ;;  %v377_v62 = vld [vmem:[#allocation2 + $0x280] sm:$0xff]  ;;  %v388_v7 = vld [vmem:[#allocation2 + $0x2d8] sm:$0xff]  ;;  %v403_v35 = vld [vmem:[#allocation2 + $0x350] sm:$0xff] }
  0xde   :  { %v272_v12 = vrot.slane %v242_v5, %v267_v0  ;;  %v244_v19 = vsub.f32 %v1537_v45, %v236_v6  ;;  %v1213_v61 = vpack.c.bf16 %v380_v59, %v378_v58  ;;  %v1215_v2 = vpack.c.bf16 %v379_v63, %v377_v62  ;;  %v381_v4 = vld [vmem:[#allocation2 + $0x2a0] sm:$0xff]  ;;  %v383_v5 = vld [vmem:[#allocation2 + $0x2b0] sm:$0xff]  ;;  %v386_v6 = vld [vmem:[#allocation2 + $0x2c8] sm:$0xff] }
  0xdf   :  { %v268_v20 = vrot.slane %v241_v8, %v267_v0  ;;  %v243_v14 = vsub.f32 %v1532_v44, %v235_v9  ;;  %v1219_v8 = vpack.c.bf16 %v383_v5, %v381_v4  ;;  %v1221_v9 = vpack.c.bf16 %v388_v7, %v386_v6  ;;  %v385_v10 = vld [vmem:[#allocation2 + $0x2c0] sm:$0xff]  ;;  %v416_v57 = vld [vmem:[#allocation2 + $0x3b8] sm:$0xff]  ;;  %v418_v62 = vld [vmem:[#allocation2 + $0x3c8] sm:$0xff] }
  0xe0   :  { %v282_v21 = vadd.f32 %v272_v12, %v262_v11  ;;  %v280_v25 = vrot.slane %v244_v19, %v267_v0  ;;  %v387_v11 = vld [vmem:[#allocation2 + $0x2d0] sm:$0xff]  ;;  %v390_v12 = vld [vmem:[#allocation2 + $0x2e8] sm:$0xff]  ;;  %v392_v19 = vld [vmem:[#allocation2 + $0x2f8] sm:$0xff]  ;;  %v1245_v52 = vpack.c.bf16 %v412_v50, %v410_v49  ;;  %v1249_v59 = vpack.c.bf16 %v416_v57, %v414_v56 }
  0xe1   :  { %v281_v26 = vadd.f32 %v268_v20, %v261_v13  ;;  %v276_v16 = vrot.slane %v243_v14, %v267_v0  ;;  %v382_v0 = vld [vmem:[#allocation2 + $0x2a8] sm:$0xff]  ;;  %v1223_v13 = vpack.c.bf16 %v387_v11, %v385_v10  ;;  %v1225_v20 = vpack.c.bf16 %v392_v19, %v390_v12  ;;  %v389_v14 = vld [vmem:[#allocation2 + $0x2e0] sm:$0xff]  ;;  %v420_v63 = vld [vmem:[#allocation2 + $0x3d8] sm:$0xff] }
  0xe2   :  { %vm286_vm0 = vcmp.ge.f32.partialorder %v282_v21, 0.0  ;;  %v290_v30 = vmul.f32 0.01, %v282_v21  ;;  %v284_v45 = vadd.f32 %v280_v25, %v264_v24  ;;  %v1217_v3 = vpack.c.bf16 %v384_v1, %v382_v0  ;;  %v401_v18 = vld [vmem:[#allocation2 + $0x340] sm:$0xff]  ;;  %v422_v4 = vld [vmem:[#allocation2 + $0x3e8] sm:$0xff]  ;;  %v424_v5 = vld [vmem:[#allocation2 + $0x3f8] sm:$0xff] }
  0xe3   :  { %vm285_vm1 = vcmp.ge.f32.partialorder %v281_v26, 0.0  ;;  %v289_v15 = vmul.f32 0.01, %v281_v26  ;;  %v1613_v32 = vadd.f32 %v276_v16, %v263_v29  ;;  %v1229_v25 = vpack.c.bf16 %v396_v23, %v394_v22  ;;  %v400_v29 = vld [vmem:[#allocation2 + $0x338] sm:$0xff]  ;;  %v661_v19 = vld [vmem:[#allocation5 + $0x80] sm:$0xff]  ;;  %v663_v23 = vld [vmem:[#allocation5 + $0x90] sm:$0xff] }
  0xe4   :  { %v294_v44 = vsel %vm286_vm0, %v282_v21, %v290_v30  ;;  %vm288_vm2 = vcmp.ge.f32.partialorder %v284_v45, 0.0  ;;  %v292_v33 = vmul.f32 0.01, %v284_v45  ;;  %v391_v21 = vld [vmem:[#allocation2 + $0x2f0] sm:$0xff]  ;;  %v1233_v30 = vpack.c.bf16 %v400_v29, %v398_v28  ;;  %v665_v29 = vld [vmem:[#allocation5 + $0xa0] sm:$0xff]  ;;  %v672_v50 = vld [vmem:[#allocation5 + $0xd8] sm:$0xff] }
  0xe5   :  { %489 = vmatprep.mubr.f32.mxu0 %v294_v44  ;;  %v293_v36 = vsel %vm285_vm1, %v281_v26, %v289_v15  ;;  %v1227_v24 = vpack.c.bf16 %v391_v21, %v389_v14  ;;  %v393_v26 = vld [vmem:[#allocation2 + $0x300] sm:$0xff]  ;;  %v399_v15 = vld [vmem:[#allocation2 + $0x330] sm:$0xff]  ;;  %v404_v44 = vld [vmem:[#allocation2 + $0x358] sm:$0xff]  ;;  %v1239_v38 = vpack.c.bf16 %v403_v35, %v401_v18  ;;  %v1253_v1 = vpack.c.bf16 %v420_v63, %v418_v62 }
  0xe6   :  { %490 = vmatmul.mubr.f32.vlgmr.msra.gmra.mrb[0].mxu0 %v293_v36  ;;  %v296_v17 = vsel %vm288_vm2, %v284_v45, %v292_v33  ;;  %v1231_v16 = vpack.c.bf16 %v395_v27, %v393_v26  ;;  %v397_v45 = vld [vmem:[#allocation2 + $0x320] sm:$0xff]  ;;  %v406_v36 = vld [vmem:[#allocation2 + $0x368] sm:$0xff]  ;;  %v1257_v7 = vpack.c.bf16 %v424_v5, %v422_v4  ;;  %v291_v11 = vmul.f32 0.01, %v1613_v32  ;;  %v647_v26 = vld [vmem:[#allocation5 + $0x10] sm:$0xff] }
  0xe7   :  { %1200 = vmatpush1.bf16.msra.mxu0 %v1199_v31  ;;  %560 = vmatprep.mubr.f32.mxu0 %v296_v17  ;;  %v402_v31 = vld [vmem:[#allocation2 + $0x348] sm:$0xff]  ;;  %v1235_v33 = vpack.c.bf16 %v399_v15, %v397_v45  ;;  %v1241_v17 = vpack.c.bf16 %v408_v37, %v406_v36  ;;  %vm287_vm3 = vcmp.ge.f32.partialorder %v1613_v32, 0.0  ;;  %v645_v14 = vld [vmem:[#allocation5] sm:$0xff]  ;;  %v648_v27 = vld [vmem:[#allocation5 + $0x18] sm:$0xff] }
  0xe8   :  { %1202 = vmatprep.subr.bf16.mxu0 %v1201_v34  ;;  %v1237_v34 = vpack.c.bf16 %v404_v44, %v402_v31  ;;  %v295_v12 = vsel %vm287_vm3, %v1613_v32, %v291_v11  ;;  %v646_v21 = vld [vmem:[#allocation5 + $0x8] sm:$0xff]  ;;  %v1267_v28 = vpack.c.bf16 %v648_v27, %v647_v26  ;;  %v667_v31 = vld [vmem:[#allocation5 + $0xb0] sm:$0xff]  ;;  %v668_v44 = vld [vmem:[#allocation5 + $0xb8] sm:$0xff] }
  0xe9   :  { %v1263_v22 = vpack.c.bf16 %v646_v21, %v645_v14  ;;  %v650_v45 = vld [vmem:[#allocation5 + $0x28] sm:$0xff]  ;;  %v652_v18 = vld [vmem:[#allocation5 + $0x38] sm:$0xff]  ;;  %v669_v36 = vld [vmem:[#allocation5 + $0xc0] sm:$0xff] }
  0xea   :  { %v670_v37 = vld [vmem:[#allocation5 + $0xc8] sm:$0xff]  ;;  %v671_v49 = vld [vmem:[#allocation5 + $0xd0] sm:$0xff]  ;;  %v676_v62 = vld [vmem:[#allocation5 + $0xf8] sm:$0xff] }
  0xeb   :  { %1204 = vmatpush1.bf16.msra.mxu0 %v1203_v39  ;;  %v405_v39 = vld [vmem:[#allocation2 + $0x360] sm:$0xff]  ;;  %v674_v57 = vld [vmem:[#allocation5 + $0xe8] sm:$0xff] }
  0xec   :  { %1206 = vmatprep.subr.bf16.mxu0 %v1205_v48  ;;  %v407_v48 = vld [vmem:[#allocation2 + $0x370] sm:$0xff] }
  0xed   :  { %v1243_v51 = vpack.c.bf16 %v407_v48, %v405_v39  ;;  %v654_v39 = vld [vmem:[#allocation5 + $0x48] sm:$0xff] }
  0xef   :  { %1208 = vmatpush1.bf16.msra.mxu0 %v1207_v53  ;;  %v409_v53 = vld [vmem:[#allocation2 + $0x380] sm:$0xff] }
  0xf0   :  { %1210 = vmatprep.subr.bf16.mxu0 %v1209_v55  ;;  %v411_v55 = vld [vmem:[#allocation2 + $0x390] sm:$0xff] }
  0xf1   :  { %v1247_v58 = vpack.c.bf16 %v411_v55, %v409_v53  ;;  %v656_v53 = vld [vmem:[#allocation5 + $0x58] sm:$0xff]  ;;  %v673_v55 = vld [vmem:[#allocation5 + $0xe0] sm:$0xff] }
  0xf3   :  { %1212 = vmatpush1.bf16.msra.mxu0 %v1211_v60  ;;  %v413_v60 = vld [vmem:[#allocation2 + $0x3a0] sm:$0xff] }
  0xf4   :  { %1214 = vmatprep.subr.bf16.mxu0 %v1213_v61  ;;  %v415_v61 = vld [vmem:[#allocation2 + $0x3b0] sm:$0xff] }
  0xf5   :  { %v1251_v0 = vpack.c.bf16 %v415_v61, %v413_v60  ;;  %v1285_v60 = vpack.c.bf16 %v674_v57, %v673_v55  ;;  %v675_v61 = vld [vmem:[#allocation5 + $0xf0] sm:$0xff] }
  0xf7   :  { %1216 = vmatpush1.bf16.msra.mxu0 %v1215_v2  ;;  %v417_v2 = vld [vmem:[#allocation2 + $0x3c0] sm:$0xff] }
  0xf8   :  { %1218 = vmatprep.subr.bf16.mxu0 %v1217_v3  ;;  %v419_v3 = vld [vmem:[#allocation2 + $0x3d0] sm:$0xff] }
  0xf9   :  { %v1255_v6 = vpack.c.bf16 %v419_v3, %v417_v2  ;;  %v660_v2 = vld [vmem:[#allocation5 + $0x78] sm:$0xff] }
  0xfb   :  { %1220 = vmatpush1.bf16.msra.mxu0 %v1219_v8  ;;  %v421_v8 = vld [vmem:[#allocation2 + $0x3e0] sm:$0xff] }
  0xfc   :  { %1222 = vmatprep.subr.bf16.mxu0 %v1221_v9  ;;  %v423_v9 = vld [vmem:[#allocation2 + $0x3f0] sm:$0xff] }
  0xfd   :  { %v1259_v10 = vpack.c.bf16 %v423_v9, %v421_v8 }
  0xff   :  { %1224 = vmatpush1.bf16.msra.mxu0 %v1223_v13  ;;  %v662_v13 = vld [vmem:[#allocation5 + $0x88] sm:$0xff] }
 0x100   :  { %1226 = vmatprep.subr.bf16.mxu0 %v1225_v20  ;;  %v1261_v20 = vpack.c.bf16 %v662_v13, %v661_v19 }
 0x102   :  { %1262 = vmatprep.subr.bf16.mxu1 %v1261_v20 }
 0x103   :  { %1228 = vmatpush1.bf16.msra.mxu0 %v1227_v24  ;;  %1264 = vmatpush3.bf16.msra.mxu1 %v1263_v22  ;;  %v664_v24 = vld [vmem:[#allocation5 + $0x98] sm:$0xff] }
 0x104   :  { %1230 = vmatprep.subr.bf16.mxu0 %v1229_v25  ;;  %v1265_v25 = vpack.c.bf16 %v664_v24, %v663_v23 }
 0x106   :  { %1266 = vmatprep.subr.bf16.mxu1 %v1265_v25 }
 0x107   :  { %1232 = vmatpush1.bf16.msra.mxu0 %v1231_v16  ;;  %1268 = vmatpush3.bf16.msra.mxu1 %v1267_v28  ;;  %v666_v16 = vld [vmem:[#allocation5 + $0xa8] sm:$0xff] }
 0x108   :  { %1234 = vmatprep.subr.bf16.mxu0 %v1233_v30  ;;  %v1269_v32 = vpack.c.bf16 %v666_v16, %v665_v29  ;;  %v649_v30 = vld [vmem:[#allocation5 + $0x20] sm:$0xff] }
 0x109   :  { %v1271_v15 = vpack.c.bf16 %v650_v45, %v649_v30 }
 0x10a   :  { %1270 = vmatprep.subr.bf16.mxu1 %v1269_v32 }
 0x10b   :  { %1236 = vmatpush1.bf16.msra.mxu0 %v1235_v33  ;;  %1272 = vmatpush3.bf16.msra.mxu1 %v1271_v15  ;;  %v1273_v33 = vpack.c.bf16 %v668_v44, %v667_v31 }
 0x10c   :  { %1238 = vmatprep.subr.bf16.mxu0 %v1237_v34  ;;  %v651_v34 = vld [vmem:[#allocation5 + $0x30] sm:$0xff] }
 0x10d   :  { %v1275_v35 = vpack.c.bf16 %v652_v18, %v651_v34  ;;  %1274 = vmatprep.subr.bf16.mxu1 %v1273_v33 }
 0x10f   :  { %1240 = vmatpush1.bf16.msra.mxu0 %v1239_v38  ;;  %1276 = vmatpush3.bf16.msra.mxu1 %v1275_v35  ;;  %v1277_v38 = vpack.c.bf16 %v670_v37, %v669_v36 }
 0x110   :  { %1242 = vmatprep.subr.bf16.mxu0 %v1241_v17  ;;  %v653_v17 = vld [vmem:[#allocation5 + $0x40] sm:$0xff] }
 0x111   :  { %v1279_v48 = vpack.c.bf16 %v654_v39, %v653_v17  ;;  %1278 = vmatprep.subr.bf16.mxu1 %v1277_v38 }
 0x113   :  { %1244 = vmatpush1.bf16.msra.mxu0 %v1243_v51  ;;  %1280 = vmatpush3.bf16.msra.mxu1 %v1279_v48  ;;  %v1281_v51 = vpack.c.bf16 %v672_v50, %v671_v49 }
 0x114   :  { %1246 = vmatprep.subr.bf16.mxu0 %v1245_v52  ;;  %v655_v52 = vld [vmem:[#allocation5 + $0x50] sm:$0xff] }
 0x115   :  { %v1283_v56 = vpack.c.bf16 %v656_v53, %v655_v52  ;;  %1282 = vmatprep.subr.bf16.mxu1 %v1281_v51  ;;  %v621_v53 = vsub.s32 4, %v1514_v40 }
 0x117   :  { %1248 = vmatpush1.bf16.msra.mxu0 %v1247_v58  ;;  %v657_v58 = vld [vmem:[#allocation5 + $0x60] sm:$0xff]  ;;  %1284 = vmatpush3.bf16.msra.mxu1 %v1283_v56 }
 0x118   :  { %1250 = vmatprep.subr.bf16.mxu0 %v1249_v59  ;;  %v658_v59 = vld [vmem:[#allocation5 + $0x68] sm:$0xff]  ;;  %1286 = vmatprep.subr.bf16.mxu1 %v1285_v60  ;;  %v58_v60 = vld [vmem:[%s1746_s1 + $0x28] sm:$0xf] }
 0x119   :  { %v1287_v63 = vpack.c.bf16 %v658_v59, %v657_v58  ;;  %v1624_v58 = vld [vmem:[%s1746_s1 + $0x20] sm:$0xf] }
 0x11b   :  { %1252 = vmatpush1.bf16.msra.mxu0 %v1251_v0  ;;  %v1289_v0 = vpack.c.bf16 %v676_v62, %v675_v61  ;;  %1288 = vmatpush3.bf16.msra.mxu1 %v1287_v63 }
 0x11c   :  { %1254 = vmatprep.subr.bf16.mxu0 %v1253_v1  ;;  %v659_v1 = vld [vmem:[#allocation5 + $0x70] sm:$0xff] }
 0x11d   :  { %v1291_v3 = vpack.c.bf16 %v660_v2, %v659_v1  ;;  %1290 = vmatprep.subr.bf16.mxu1 %v1289_v0 }
 0x11f   :  { %1256 = vmatpush1.bf16.msra.mxu0 %v1255_v6  ;;  %1292 = vmatpush3.bf16.msra.mxu1 %v1291_v3 }
 0x120   :  { %1258 = vmatprep.subr.bf16.mxu0 %v1257_v7 }
 0x123   :  { %1260 = vmatpush1.bf16.msra.mxu0 %v1259_v10 }
 0x126   :  { %561 = vmatmul.mubr.f32.vlgmr.msra.gmra.mrb[0].mxu0 %v295_v12 }
 0x1f9   :  { %v562_v4 = vpop.f32.mrb[0].mxu0 }
 0x1fa   :  { %v567_v5 = vrot.slane %v562_v4, 4  ;;  %v581_v6 = vmul.f32 %v562_v4, %v562_v4  ;;  %v564_v7 = vpop.f32.mrb[1].mxu0 }
 0x1fb   :  { %v573_v8 = vrot.slane %v564_v7, 4  ;;  %v582_v9 = vmul.f32 %v564_v7, %v564_v7 }
 0x1fc   :  { %v568_v10 = vadd.f32 %v567_v5, %v562_v4  ;;  %v583_v11 = vrot.slane %v581_v6, 4 }
 0x1fd   :  { %v574_v12 = vadd.f32 %v573_v8, %v564_v7  ;;  %v589_v19 = vrot.slane %v582_v9, 4 }
 0x1fe   :  { %v569_v13 = vrot.slane %v568_v10, 2  ;;  %v584_v20 = vadd.f32 %v583_v11, %v581_v6 }
 0x1ff   :  { %v575_v14 = vrot.slane %v574_v12, 2  ;;  %v590_v21 = vadd.f32 %v589_v19, %v582_v9  ;;  %v786_v19 = vld [vmem:[%s1749_s4] sm:$0xff] }
 0x200   :  { %v570_v22 = vadd.f32 %v569_v13, %v568_v10  ;;  %v585_v23 = vrot.slane %v584_v20, 2  ;;  %v788_v13 = vld [vmem:[%s1749_s4 + $0x10] sm:$0xff] }
 0x201   :  { %v576_v24 = vadd.f32 %v575_v14, %v574_v12  ;;  %v591_v25 = vrot.slane %v590_v21, 2 }
 0x202   :  { %v571_v26 = vrot.slane %v570_v22, 1  ;;  %v586_v27 = vadd.f32 %v585_v23, %v584_v20  ;;  %v789_v20 = vld [vmem:[%s1749_s4 + $0x18] sm:$0xff] }
 0x203   :  { %v577_v28 = vrot.slane %v576_v24, 1  ;;  %v592_v29 = vadd.f32 %v591_v25, %v590_v21  ;;  %v1297_v14 = vpack.c.bf16 %v789_v20, %v788_v13  ;;  %v790_v21 = vld [vmem:[%s1749_s4 + $0x20] sm:$0xff]  ;;  %v793_v25 = vld [vmem:[%s1749_s4 + $0x38] sm:$0xff] }
 0x204   :  { %v572_v16 = vadd.f32 %v571_v26, %v570_v22  ;;  %v587_v32 = vrot.slane %v586_v27, 1  ;;  %v791_v22 = vld [vmem:[%s1749_s4 + $0x28] sm:$0xff]  ;;  %v917_v20 = vld [vmem:[%s1750_s5 + $0x18] sm:$0xff] }
 0x205   :  { %v578_v30 = vadd.f32 %v577_v28, %v576_v24  ;;  %v593_v45 = vrot.slane %v592_v29, 1  ;;  %v1300_v23 = vpack.c.bf16 %v791_v22, %v790_v21  ;;  %v792_v24 = vld [vmem:[%s1749_s4 + $0x30] sm:$0xff]  ;;  %v795_v28 = vld [vmem:[%s1749_s4 + $0x48] sm:$0xff]  ;;  %v918_v21 = vld [vmem:[%s1750_s5 + $0x20] sm:$0xff] }
 0x206   :  { %v579_v15 = vmul.f32 0.125, %v572_v16  ;;  %v588_v31 = vadd.f32 %v587_v32, %v586_v27  ;;  %v1303_v26 = vpack.c.bf16 %v793_v25, %v792_v24  ;;  %v794_v27 = vld [vmem:[%s1749_s4 + $0x40] sm:$0xff]  ;;  %v796_v16 = vld [vmem:[%s1749_s4 + $0x50] sm:$0xff]  ;;  %v797_v32 = vld [vmem:[%s1749_s4 + $0x58] sm:$0xff] }
 0x207   :  { %v580_v44 = vmul.f32 0.125, %v578_v30  ;;  %v594_v33 = vadd.f32 %v593_v45, %v592_v29  ;;  %v1306_v29 = vpack.c.bf16 %v795_v28, %v794_v27  ;;  %v1309_v30 = vpack.c.bf16 %v797_v32, %v796_v16  ;;  %v798_v45 = vld [vmem:[%s1749_s4 + $0x60] sm:$0xff]  ;;  %v919_v22 = vld [vmem:[%s1750_s5 + $0x28] sm:$0xff]  ;;  %v920_v24 = vld [vmem:[%s1750_s5 + $0x30] sm:$0xff] }
 0x208   :  { %v595_v34 = vmul.f32 0.125, %v588_v31  ;;  %v597_v18 = vmul.f32 %v579_v15, %v579_v15  ;;  %v1450_v31 = vmov 0.0   ;;  %v921_v25 = vld [vmem:[%s1750_s5 + $0x38] sm:$0xff] }
 0x209   :  { %v596_v35 = vmul.f32 0.125, %v594_v33  ;;  %v598_v36 = vmul.f32 %v580_v44, %v580_v44  ;;  %v800_v33 = vld [vmem:[%s1749_s4 + $0x70] sm:$0xff] }
 0x20a   :  { %v599_v37 = vsub.f32 %v595_v34, %v597_v18  ;;  %v801_v34 = vld [vmem:[%s1749_s4 + $0x78] sm:$0xff] }
 0x20b   :  { %v600_v38 = vsub.f32 %v596_v35, %v598_v36  ;;  %v1315_v18 = vpack.c.bf16 %v801_v34, %v800_v33 }
 0x20c   :  { %v601_v17 = vmax.f32 %v599_v37, 0.0 }
 0x20d   :  { %v602_v39 = vmax.f32 %v600_v38, 0.0 }
 0x20e   :  { %v603_v48 = vadd.f32 1e-05, %v601_v17 }
 0x20f   :  { %v604_v49 = vadd.f32 1e-05, %v602_v39 }
 0x210   :  { %1356 = vrsqrt.f32 %v603_v48 }
 0x211   :  { %1358 = vrsqrt.f32 %v604_v49 }
 0x21a   :  { %v1357_v50 = vpop.eup %1356 }
 0x21b   :  { %v1359_v51 = vpop.eup %1358  ;;  %v607_v52 = vmul.f32 %v1357_v50, %v1519_v41 }
 0x21c   :  { %v608_v55 = vmul.f32 %v1359_v51, %v1527_v43 }
 0x21d   :  { %v609_v56 = vmul.f32 %v607_v52, %v579_v15  ;;  %v622_v59 = vrot.slane %v607_v52, %v621_v53  ;;  %v799_v15 = vld [vmem:[%s1749_s4 + $0x68] sm:$0xff] }
 0x21e   :  { %v610_v57 = vmul.f32 %v608_v55, %v580_v44  ;;  %v626_v63 = vrot.slane %v608_v55, %v621_v53  ;;  %v1312_v44 = vpack.c.bf16 %v799_v15, %v798_v45 }
 0x21f   :  { %v613_v61 = vrot.slane %v609_v56, 4  ;;  %v627_v2 = vmul.f32 %v622_v59, %v562_v4  ;;  %v787_v4 = vld [vmem:[%s1749_s4 + $0x8] sm:$0xff] }
 0x220   :  { %v614_v62 = vrot.slane %v610_v57, 4  ;;  %v628_v3 = vmul.f32 %v626_v63, %v564_v7  ;;  %v1294_v7 = vpack.c.bf16 %v787_v4, %v786_v19 }
 0x221   :  { %v617_v0 = vsub.f32 %v1624_v58, %v613_v61 }
 0x222   :  { %v618_v1 = vsub.f32 %v58_v60, %v614_v62 }
 0x223   :  { %v632_v43 = vrot.slane %v617_v0, %v1522_v42 }
 0x224   :  { %v636_v5 = vrot.slane %v618_v1, %v1522_v42  ;;  %v1448_v42 = vmov 0.0|0.0  }
 0x225   :  { %v637_v6 = vadd.f32 %v632_v43, %v627_v2  ;;  %1293 = vmatprep.subr.bf16.mxu1 %v1448_v42 }
 0x226   :  { %v638_v8 = vadd.f32 %v636_v5, %v628_v3  ;;  %v775_v3 = vsub.s32 5, %v1514_v40 }
 0x227   :  { %v641_v9 = vmul.f32 0.01, %v637_v6  ;;  %vm639_vm5 = vcmp.ge.f32.partialorder %v637_v6, 0.0 }
 0x228   :  { %vm640_vm4 = vcmp.ge.f32.partialorder %v638_v8, 0.0  ;;  %v642_v10 = vmul.f32 0.01, %v638_v8 }
 0x229   :  { %v643_v12 = vsel %vm639_vm5, %v637_v6, %v641_v9 }
 0x22a   :  { %v644_v11 = vsel %vm640_vm4, %v638_v8, %v642_v10 }
 0x22b   :  { %741 = vmatprep.mubr.f32.mxu1 %v644_v11 }
 0x22c   :  { %742 = vmatmul.mubr.f32.vlgmr.msra.gmra.mrb[0].mxu1 %v643_v12 }
 0x22d   :  { %1295 = vmatpush3.bf16.msra.mxu1 %v1294_v7  ;;  %1111 = vmatprep.mubr.msk.f32.mxu1 %vm1449_vm6, %v1450_v31  ;;  %v915_v7 = vld [vmem:[%s1750_s5 + $0x8] sm:$0xff] }
 0x22e   :  { %1296 = vmatprep.subr.bf16.mxu1 %v1448_v42 }
 0x231   :  { %1298 = vmatpush3.bf16.msra.mxu1 %v1297_v14 }
 0x232   :  { %1299 = vmatprep.subr.bf16.mxu1 %v1448_v42 }
 0x235   :  { %1301 = vmatpush3.bf16.msra.mxu1 %v1300_v23  ;;  %v1324_v23 = vpack.c.bf16 %v919_v22, %v918_v21 }
 0x236   :  { %1302 = vmatprep.subr.bf16.mxu1 %v1448_v42 }
 0x239   :  { %1304 = vmatpush3.bf16.msra.mxu1 %v1303_v26  ;;  %v1327_v26 = vpack.c.bf16 %v921_v25, %v920_v24 }
 0x23a   :  { %1305 = vmatprep.subr.bf16.mxu1 %v1448_v42 }
 0x23d   :  { %1307 = vmatpush3.bf16.msra.mxu1 %v1306_v29 }
 0x23e   :  { %1308 = vmatprep.subr.bf16.mxu1 %v1448_v42 }
 0x241   :  { %1310 = vmatpush3.bf16.msra.mxu1 %v1309_v30 }
 0x242   :  { %1311 = vmatprep.subr.bf16.mxu1 %v1448_v42 }
 0x245   :  { %1313 = vmatpush3.bf16.msra.mxu1 %v1312_v44 }
 0x246   :  { %1314 = vmatprep.subr.bf16.mxu1 %v1448_v42 }
 0x249   :  { %1316 = vmatpush3.bf16.msra.mxu1 %v1315_v18 }
 0x24a   :  { %1317 = vmatprep.subr.bf16.mxu1 %v1448_v42 }
 0x2ff   :  { %v1050_v35 = vpop.f32.mrb[0].mxu1 }
 0x300   :  { %v1051_v36 = vpop.f32.mrb[1].mxu1 }
 0x301   :  { %v1052_v37 = vadd.f32 %v1051_v36, %v1050_v35 }
 0x303   :  { %v747_v38 = vrot.slane %v1052_v37, 4  ;;  %v754_v17 = vmul.f32 %v1052_v37, %v1052_v37 }
 0x305   :  { %v748_v39 = vadd.f32 %v1052_v37, %v747_v38  ;;  %v755_v48 = vrot.slane %v754_v17, 4 }
 0x307   :  { %v749_v49 = vrot.slane %v748_v39, 2  ;;  %v756_v50 = vadd.f32 %v755_v48, %v754_v17 }
 0x309   :  { %v750_v51 = vadd.f32 %v749_v49, %v748_v39  ;;  %v757_v52 = vrot.slane %v756_v50, 2 }
 0x30b   :  { %v751_v53 = vrot.slane %v750_v51, 1  ;;  %v758_v55 = vadd.f32 %v757_v52, %v756_v50  ;;  %v1366_v52 = vld [vmem:[%s1746_s1] sm:$0xff]  ;;  %s1451_s1 = smov [#allocation7]  }
 0x30c   :  { %s1007_s30 = sshll.u32 %s1451_s1, 4  ;;  %s1008_s30 = int_to_ptr.vmem [resolvable:$true] %s1007_s30 }
 0x30d   :  { %v752_v56 = vadd.f32 %v751_v53, %v750_v51  ;;  %v759_v57 = vrot.slane %v758_v55, 1  ;;  %s1411_s7 = scalar_lea.vmem %s1008_s30, 128  ;;  %p1416_p3 = scmp.lt.s32.totalorder %s1008_s30, %s1008_s30 }
 0x30e   :  { %p1412_p2 = scmp.ne.s32.totalorder %s1008_s30, %s1411_s7  ;;  %p1417_p4 = scmp.lt.s32.totalorder %s1411_s7, %s1411_s7 }
 0x30f   :  { %v753_v59 = vmul.f32 0.125, %v752_v56  ;;  %v760_v60 = vadd.f32 %v759_v57, %v758_v55  ;;  %v903_v55 = vsub.s32 6, %v1514_v40 }
 0x310   :  { %p1418_p5 = por %p1417_p4, %p1416_p3 }
 0x311   :  { %v761_v61 = vmul.f32 0.125, %v760_v60  ;;  %v762_v62 = vmul.f32 %v753_v59, %v753_v59 }
 0x312   :  { %p1419_p6 = pnand %p1418_p5, %p1412_p2 }
 0x313   :  { %v763_v63 = vsub.f32 %v761_v61, %v762_v62 }
 0x315   :  { %v764_v0 = vmax.f32 %v763_v63, 0.0 }
 0x317   :  { %v765_v1 = vadd.f32 1e-05, %v764_v0 }
 0x319   :  { %1360 = vrsqrt.f32 %v765_v1 }
 0x323   :  { %v1361_v2 = vpop.eup %1360 }
 0x324   :  { %v767_v43 = vmul.f32 %v1361_v2, %v1519_v41  ;;  %v914_v41 = vld [vmem:[%s1750_s5] sm:$0xff]  ;;  %v925_v2 = vrot.slane %v1624_v58, %v1595_v54 }
 0x325   :  { %v1318_v13 = vpack.c.bf16 %v915_v7, %v914_v41 }
 0x326   :  { %v768_v5 = vmul.f32 %v767_v43, %v753_v59  ;;  %v776_v6 = vrot.slane %v767_v43, %v775_v3 }
 0x328   :  { %v770_v8 = vrot.slane %v768_v5, 4  ;;  %v777_v10 = vmul.f32 %v1052_v37, %v776_v6 }
 0x32a   :  { %v772_v9 = vsub.f32 %v1624_v58, %v770_v8 }
 0x32c   :  { %v781_v11 = vrot.slane %v772_v9, %v1543_v47  ;;  %v916_v47 = vld [vmem:[%s1750_s5 + $0x10] sm:$0xff] }
 0x32d   :  { %v1321_v14 = vpack.c.bf16 %v917_v20, %v916_v47 }
 0x32e   :  { %v782_v12 = vadd.f32 %v781_v11, %v777_v10 }
 0x330   :  { %vm783_vm7 = vcmp.ge.f32.partialorder %v782_v12, 0.0  ;;  %v784_v19 = vmul.f32 0.01, %v782_v12 }
 0x332   :  { %v785_v4 = vsel %vm783_vm7, %v782_v12, %v784_v19 }
 0x333   :  { %1112 = vmatmul.mubr.f32.vlgmr.msra.gmra.mrb[2].mxu1 %v785_v4 }
 0x334   :  { %1130 = vmatprep.mubr.msk.f32.mxu1 %vm1449_vm6, %v1450_v31  ;;  %1319 = vmatpush3.bf16.msra.mxu1 %v1318_v13 }
 0x335   :  { %1320 = vmatprep.subr.bf16.mxu1 %v1448_v42 }
 0x338   :  { %1322 = vmatpush3.bf16.msra.mxu1 %v1321_v14 }
 0x339   :  { %1323 = vmatprep.subr.bf16.mxu1 %v1448_v42 }
 0x33c   :  { %1325 = vmatpush3.bf16.msra.mxu1 %v1324_v23 }
 0x33d   :  { %1326 = vmatprep.subr.bf16.mxu1 %v1448_v42 }
 0x340   :  { %1328 = vmatpush3.bf16.msra.mxu1 %v1327_v26 }
 0x406   :  { %v868_v27 = vpop.f32.mrb[2].mxu1 }
 0x407   :  { %v873_v28 = vsel %vm872_vm8, %v868_v27, 0.0  ;;  %v881_v29 = vmul.f32 %v868_v27, %v868_v27  ;;  %v1113_v16 = vpop.f32.mrb[3].mxu1 }
 0x408   :  { %v874_v32 = vrot.slane %v873_v28, 4 }
 0x409   :  { %v882_v30 = vsel %vm872_vm8, %v881_v29, 0.0 }
 0x40a   :  { %v875_v42 = vadd.f32 %v874_v32, %v873_v28  ;;  %v883_v45 = vrot.slane %v882_v30, 4 }
 0x40c   :  { %v876_v15 = vrot.slane %v875_v42, 2  ;;  %v884_v31 = vadd.f32 %v883_v45, %v882_v30 }
 0x40e   :  { %v877_v44 = vadd.f32 %v876_v15, %v875_v42  ;;  %v885_v33 = vrot.slane %v884_v31, 2 }
 0x410   :  { %v878_v34 = vrot.slane %v877_v44, 1  ;;  %v886_v18 = vadd.f32 %v885_v33, %v884_v31 }
 0x412   :  { %v879_v35 = vadd.f32 %v878_v34, %v877_v44  ;;  %v887_v36 = vrot.slane %v886_v18, 1 }
 0x414   :  { %v880_v37 = vmul.f32 0.125, %v879_v35  ;;  %v888_v38 = vadd.f32 %v887_v36, %v886_v18 }
 0x416   :  { %v889_v17 = vmul.f32 0.125, %v888_v38  ;;  %v890_v39 = vmul.f32 %v880_v37, %v880_v37 }
 0x418   :  { %v891_v48 = vsub.f32 %v889_v17, %v890_v39 }
 0x41a   :  { %v892_v49 = vmax.f32 %v891_v48, 0.0 }
 0x41c   :  { %v893_v50 = vadd.f32 1e-05, %v892_v49 }
 0x41e   :  { %1362 = vrsqrt.f32 %v893_v50 }
 0x428   :  { %v1363_v51 = vpop.eup %1362 }
 0x429   :  { %v895_v53 = vmul.f32 %v1366_v52, %v1363_v51 }
 0x42b   :  { %v896_v56 = vmul.f32 %v895_v53, %v880_v37  ;;  %v904_v59 = vrot.slane %v895_v53, %v903_v55 }
 0x42d   :  { %v898_v57 = vrot.slane %v896_v56, 4  ;;  %v905_v61 = vmul.f32 %v904_v59, %v868_v27 }
 0x42f   :  { %v900_v60 = vsub.f32 %v1624_v58, %v898_v57 }
 0x431   :  { %v909_v62 = vrot.slane %v900_v60, %v1540_v46 }
 0x433   :  { %v910_v63 = vadd.f32 %v909_v62, %v905_v61 }
 0x435   :  { %v912_v0 = vmul.f32 0.01, %v910_v63  ;;  %vm911_vm9 = vcmp.ge.f32.partialorder %v910_v63, 0.0 }
 0x437   :  { %v913_v1 = vsel %vm911_vm9, %v910_v63, %v912_v0 }
 0x438   :  { %1131 = vmatmul.mubr.msk.f32.vlgmr.msra.gmra.mrb[4].mxu1 %vm872_vm8, %v913_v1 }
 0x50b   :  { %v995_v43 = vpop.f32.mrb[4].mxu1 }
 0x50c   :  { %v996_v3 = vadd.f32 %v995_v43, %v925_v2  ;;  %v1132_v40 = vpop.f32.mrb[5].mxu1 }
 0x50e   :  { %1364 = vtanh.f32 %v996_v3 }
 0x518   :  { %v1365_v5 = vpop.eup %1364 }
 0x519   :  { %1000 = vst [vmem:[#allocation7] sm:$0xff] %v1365_v5 }
 0x51a   :  { %1422 = shalt.err (!%p1419_p6)
}
 0x51b   :  { %s1423_s10 = scalar_lea.hbm %s1751_s6, 128 }
 0x51c   :  { %p1424_p7 = scmp.ne.s32.totalorder %s1751_s6, %s1423_s10  ;;  %p1427_p8 = scmp.lt.u32.totalorder %s1423_s10, %s1751_s6 }
 0x51e   :  { %p1429_p9 = pnand %p1427_p8, %p1424_p7 }
 0x520   :  { %1432 = shalt.err (!%p1429_p9)
}
 0x521   :  { %1010 = dma.vmem_to_hbm [thread:$0]  %s1008_s30, 128, %s1751_s6, [#allocation4]  }
 0x522   :  { %1437 = dma.done.wait [#allocation4], 128  }
 0x523   :  { %1438 = vsyncadd [#allocation4], 4294967168 }
 0x524   :  { %1014 = vsyncpa [#allocation3], 1 }
 0x525   :  { %1015 = vsyncpa [#allocation6], 1 }
 0x526   :  { %1016 = vsyncpa [#allocation4], 1 }

</bundles_post_ra>
